<compile_context>
chip_gen: v7x
topology: tpu7x:2x2x1
jax: 0.10.0
libtpu: 0.0.40
codegen_flags: <defaults>
</compile_context>

<pallas_src>
import jax
import jax.numpy as jnp
from jax.experimental import pallas as pl
from jax.experimental.pallas import tpu as pltpu


def _round_up(x, m):
    return (x + m - 1) // m * m


def dec_kernel(z_ref, w1_ref, b1_ref, w2_ref, b2_ref, w3_ref, b3_ref, o_ref):
    # fc1 + ReLU  (bf16 operands on the MXU, f32 accumulation; biases in f32)
    h1 = jnp.dot(z_ref[...].astype(jnp.bfloat16), w1_ref[...],
                 preferred_element_type=jnp.float32)
    h1 = jnp.maximum(h1 + b1_ref[...], 0.0)
    # fc2 + ReLU
    h2 = jnp.dot(h1.astype(jnp.bfloat16), w2_ref[...],
                 preferred_element_type=jnp.float32)
    h2 = jnp.maximum(h2 + b2_ref[...], 0.0)
    # fc3 + sigmoid
    h3 = jnp.dot(h2.astype(jnp.bfloat16), w3_ref[...],
                 preferred_element_type=jnp.float32)
    h3 = h3 + b3_ref[...]
    # sigmoid(x) = 0.5 * tanh(0.5*x) + 0.5  -> single EUP transcendental.
    o_ref[...] = 0.5 * jnp.tanh(0.5 * h3) + 0.5


def prepare_params(params):
    """One-time parameter prep (call once, reuse across forward calls).

    Weights -> bf16 (halves the dominant weight HBM->VMEM DMA stream and runs
    bf16 x bf16 on the MXU).  Biases stay f32: they total <4 KB, so there is
    no bandwidth win and f32 keeps the accumulator add exact.
    """
    w1, b1, w2, b2, w3, b3 = params
    return (w1.astype(jnp.bfloat16), b1.astype(jnp.float32),
            w2.astype(jnp.bfloat16), b2.astype(jnp.float32),
            w3.astype(jnp.bfloat16), b3.astype(jnp.float32))


def dec_forward(z, prepared, *, tb=1024):
    """z: (B, dim_z) float32 -> (B, 1, 28, 28) float32 (NCHW, like PyTorch).

    `prepared` comes from prepare_params(); `tb` is the max batch tile
    (sweep parameter; 512-1024 amortizes the ~0.35 us/grid-step overhead).
    """
    w1, b1, w2, b2, w3, b3 = prepared
    B, dim_z = z.shape
    dim_out = w3.shape[1]                      # 784

    # Grid-step / tile selection:
    #   n_steps = cdiv(B, tb), but >=2 at moderate batch so both v7x
    #   TensorCores get work under dimension_semantics=("parallel",).
    #   TB ~ B / n_steps rounded up to 8 sublanes -> batch padding is at most
    #   n_steps*8 - 1 rows (vs. up to TB-8 with the old policy).
    n_steps = pl.cdiv(B, tb)
    if B >= 256:
        n_steps = max(n_steps, 2)
    TB = _round_up(pl.cdiv(B, n_steps), 8)
    B_pad = n_steps * TB
    if B_pad != B:
        z = jnp.pad(z, ((0, B_pad - B), (0, 0)))

    out_flat = pl.pallas_call(
        dec_kernel,
        out_shape=jax.ShapeDtypeStruct((B_pad, dim_out), jnp.float32),
        grid_spec=pltpu.PrefetchScalarGridSpec(
            num_scalar_prefetch=0,
            grid=(n_steps,),
            in_specs=[
                # activations: tiled over the batch grid
                pl.BlockSpec((TB, dim_z), lambda i: (i, 0)),
                # weights / biases: constant block index -> VMEM-resident
                # across grid steps (no re-DMA).  Weights total ~0.5 MB bf16,
                # so the default double-buffering costs negligible VMEM and we
                # skip pipeline_mode overrides for portability.
                pl.BlockSpec(w1.shape, lambda i: (0, 0)),
                pl.BlockSpec(b1.shape, lambda i: (0, 0)),
                pl.BlockSpec(w2.shape, lambda i: (0, 0)),
                pl.BlockSpec(b2.shape, lambda i: (0, 0)),
                pl.BlockSpec(w3.shape, lambda i: (0, 0)),
                pl.BlockSpec(b3.shape, lambda i: (0, 0)),
            ],
            # 784-wide output: last block dim equals the full array dim, so no
            # 896 padding and no post-kernel depad copy; only the final
            # 16-lane chunk of each row is a masked store.
            out_specs=pl.BlockSpec((TB, dim_out), lambda i: (i, 0)),
        ),
        compiler_params=pltpu.CompilerParams(
            dimension_semantics=("parallel",),   # batch axis -> both TCs on v7x
        ),
    )(z, w1, b1, w2, b2, w3, b3)

    # Drop the (at most n_steps*8-1) padded batch rows, then NCHW view.
    if B_pad != B:
        out_flat = out_flat[:B]
    return out_flat.reshape(-1, 1, 28, 28)


def init_params(key, dim_in, dim1, dim2, dim_z):
    """Deterministic synthetic init. Weights stored as (in, out)."""
    ks = jax.random.split(key, 6)
    scale = 0.05
    w1 = scale * jax.random.normal(ks[0], (dim_z, dim2), jnp.float32)
    b1 = scale * jax.random.normal(ks[1], (1, dim2), jnp.float32)
    w2 = scale * jax.random.normal(ks[2], (dim2, dim1), jnp.float32)
    b2 = scale * jax.random.normal(ks[3], (1, dim1), jnp.float32)
    w3 = scale * jax.random.normal(ks[4], (dim1, dim_in), jnp.float32)
    b3 = scale * jax.random.normal(ks[5], (1, dim_in), jnp.float32)
    return (w1, b1, w2, b2, w3, b3)


def dec_forward_ref(z, params):
    """Plain-JAX f32 reference for correctness checking."""
    w1, b1, w2, b2, w3, b3 = params
    h1 = jnp.maximum(z @ w1 + b1, 0.0)
    h2 = jnp.maximum(h1 @ w2 + b2, 0.0)
    h3 = jax.nn.sigmoid(h2 @ w3 + b3)
    return h3.reshape(-1, 1, 28, 28)


if __name__ == "__main__":
    # Module shapes: dim_z=10; output .view(-1,1,28,28) implies dim_in=784.
    dim_z, dim2, dim1, dim_in = 10, 128, 256, 784
    B = 8

    key = jax.random.PRNGKey(0)
    k_z, k_p = jax.random.split(key)
    z = jax.random.normal(k_z, (B, dim_z), jnp.float32)
    params = init_params(k_p, dim_in, dim1, dim2, dim_z)

    prepared = prepare_params(params)          # one-time bf16 weight prep
    out = dec_forward(z, prepared)
    out = jax.block_until_ready(out)

    ref = dec_forward_ref(z, params)
    assert out.shape == (B, 1, 28, 28), out.shape
    # bf16 weight/activation quantization -> loose-ish atol (tanh-sigmoid is
    # exact, so this is purely the bf16 matmul quantization error).
    assert jnp.allclose(out, ref, atol=2e-2, rtol=0.0), float(
        jnp.max(jnp.abs(out - ref)))

    print("KERNEL_OK")
</pallas_src>

<mosaic_0001>
module attributes {stable_mosaic.version = 11 : i64} {
  func.func @dec_kernel(%arg0: i32, %arg1: memref<8x10xf32, #tpu.memory_space<vmem>>, %arg2: memref<10x128xbf16, #tpu.memory_space<vmem>>, %arg3: memref<1x128xf32, #tpu.memory_space<vmem>>, %arg4: memref<128x256xbf16, #tpu.memory_space<vmem>>, %arg5: memref<1x256xf32, #tpu.memory_space<vmem>>, %arg6: memref<256x784xbf16, #tpu.memory_space<vmem>>, %arg7: memref<1x784xf32, #tpu.memory_space<vmem>>, %arg8: memref<8x784xf32, #tpu.memory_space<vmem>>) attributes {dimension_semantics = [#tpu.dimension_semantics<parallel>], iteration_bounds = array<i64: 1>, scalar_prefetch = 0 : i64, scratch_operands = 0 : i64, tpu.core_type = #tpu.core_type<tc>, window_params = [{transform_indices = @transform_0, window_bounds = array<i64: 8, 10>}, {pipeline_mode = #tpu.pipeline_mode<synchronous>, transform_indices = @transform_1, window_bounds = array<i64: 10, 128>}, {pipeline_mode = #tpu.pipeline_mode<synchronous>, transform_indices = @transform_2, window_bounds = array<i64: 1, 128>}, {pipeline_mode = #tpu.pipeline_mode<synchronous>, transform_indices = @transform_3, window_bounds = array<i64: 128, 256>}, {pipeline_mode = #tpu.pipeline_mode<synchronous>, transform_indices = @transform_4, window_bounds = array<i64: 1, 256>}, {pipeline_mode = #tpu.pipeline_mode<synchronous>, transform_indices = @transform_5, window_bounds = array<i64: 256, 784>}, {pipeline_mode = #tpu.pipeline_mode<synchronous>, transform_indices = @transform_6, window_bounds = array<i64: 1, 784>}, {transform_indices = @transform_7, window_bounds = array<i64: 8, 784>}]} {
    %c0 = arith.constant 0 : index
    %c0_0 = arith.constant 0 : index
    %0 = vector.load %arg1[%c0, %c0_0] : memref<8x10xf32, #tpu.memory_space<vmem>>, vector<8x10xf32>
    %1 = arith.truncf %0 : vector<8x10xf32> to vector<8x10xbf16>
    %c0_1 = arith.constant 0 : index
    %c0_2 = arith.constant 0 : index
    %2 = vector.load %arg2[%c0_1, %c0_2] : memref<10x128xbf16, #tpu.memory_space<vmem>>, vector<10x128xbf16>
    %cst = arith.constant dense<0.000000e+00> : vector<8x128xf32>
    %3 = tpu.matmul %1, %2, %cst {dimension_numbers = #tpu.dot_dimension_numbers<[1], [0], [0], [1], [0, 0, 1, 1], [], []>} : vector<8x10xbf16>, vector<10x128xbf16>, vector<8x128xf32> -> vector<8x128xf32>
    %c0_3 = arith.constant 0 : index
    %c0_4 = arith.constant 0 : index
    %4 = vector.load %arg3[%c0_3, %c0_4] : memref<1x128xf32, #tpu.memory_space<vmem>>, vector<1x128xf32>
    %5 = vector.broadcast %4 : vector<1x128xf32> to vector<8x128xf32>
    %6 = arith.addf %3, %5 : vector<8x128xf32>
    %cst_5 = arith.constant 0.000000e+00 : f32
    %7 = vector.broadcast %cst_5 : f32 to vector<8x128xf32>
    %8 = arith.maximumf %6, %7 : vector<8x128xf32>
    %9 = arith.truncf %8 : vector<8x128xf32> to vector<8x128xbf16>
    %c0_6 = arith.constant 0 : index
    %c0_7 = arith.constant 0 : index
    %10 = vector.load %arg4[%c0_6, %c0_7] : memref<128x256xbf16, #tpu.memory_space<vmem>>, vector<128x256xbf16>
    %cst_8 = arith.constant dense<0.000000e+00> : vector<8x256xf32>
    %11 = tpu.matmul %9, %10, %cst_8 {dimension_numbers = #tpu.dot_dimension_numbers<[1], [0], [0], [1], [0, 0, 1, 1], [], []>} : vector<8x128xbf16>, vector<128x256xbf16>, vector<8x256xf32> -> vector<8x256xf32>
    %c0_9 = arith.constant 0 : index
    %c0_10 = arith.constant 0 : index
    %12 = vector.load %arg5[%c0_9, %c0_10] : memref<1x256xf32, #tpu.memory_space<vmem>>, vector<1x256xf32>
    %13 = vector.broadcast %12 : vector<1x256xf32> to vector<8x256xf32>
    %14 = arith.addf %11, %13 : vector<8x256xf32>
    %cst_11 = arith.constant 0.000000e+00 : f32
    %15 = vector.broadcast %cst_11 : f32 to vector<8x256xf32>
    %16 = arith.maximumf %14, %15 : vector<8x256xf32>
    %17 = arith.truncf %16 : vector<8x256xf32> to vector<8x256xbf16>
    %c0_12 = arith.constant 0 : index
    %c0_13 = arith.constant 0 : index
    %18 = vector.load %arg6[%c0_12, %c0_13] : memref<256x784xbf16, #tpu.memory_space<vmem>>, vector<256x784xbf16>
    %cst_14 = arith.constant dense<0.000000e+00> : vector<8x784xf32>
    %19 = tpu.matmul %17, %18, %cst_14 {dimension_numbers = #tpu.dot_dimension_numbers<[1], [0], [0], [1], [0, 0, 1, 1], [], []>} : vector<8x256xbf16>, vector<256x784xbf16>, vector<8x784xf32> -> vector<8x784xf32>
    %c0_15 = arith.constant 0 : index
    %c0_16 = arith.constant 0 : index
    %20 = vector.load %arg7[%c0_15, %c0_16] : memref<1x784xf32, #tpu.memory_space<vmem>>, vector<1x784xf32>
    %21 = vector.broadcast %20 : vector<1x784xf32> to vector<8x784xf32>
    %22 = arith.addf %19, %21 : vector<8x784xf32>
    %cst_17 = arith.constant 5.000000e-01 : f32
    %23 = vector.broadcast %cst_17 : f32 to vector<8x784xf32>
    %24 = arith.mulf %23, %22 : vector<8x784xf32>
    %25 = math.tanh %24 : vector<8x784xf32>
    %cst_18 = arith.constant 5.000000e-01 : f32
    %26 = vector.broadcast %cst_18 : f32 to vector<8x784xf32>
    %27 = arith.mulf %26, %25 : vector<8x784xf32>
    %cst_19 = arith.constant 5.000000e-01 : f32
    %28 = vector.broadcast %cst_19 : f32 to vector<8x784xf32>
    %29 = arith.addf %27, %28 : vector<8x784xf32>
    %c0_20 = arith.constant 0 : index
    %c0_21 = arith.constant 0 : index
    %30 = vector.load %arg8[%c0_20, %c0_21] : memref<8x784xf32, #tpu.memory_space<vmem>>, vector<8x784xf32>
    tpu.vector_store %arg8[%c0_20, %c0_21], %29 {strides = array<i32>} : memref<8x784xf32, #tpu.memory_space<vmem>>, vector<8x784xf32>,
    return
  }
  func.func @transform_0(%arg0: i32) -> (i32, i32) {
    %c0_i32 = arith.constant 0 : i32
    %c0_i32_0 = arith.constant 0 : i32
    return %arg0, %c0_i32 : i32, i32
  }
  func.func @transform_1(%arg0: i32) -> (i32, i32) {
    %c0_i32 = arith.constant 0 : i32
    %c0_i32_0 = arith.constant 0 : i32
    %c0_i32_1 = arith.constant 0 : i32
    return %c0_i32, %c0_i32_0 : i32, i32
  }
  func.func @transform_2(%arg0: i32) -> (i32, i32) {
    %c0_i32 = arith.constant 0 : i32
    %c0_i32_0 = arith.constant 0 : i32
    %c0_i32_1 = arith.constant 0 : i32
    return %c0_i32, %c0_i32_0 : i32, i32
  }
  func.func @transform_3(%arg0: i32) -> (i32, i32) {
    %c0_i32 = arith.constant 0 : i32
    %c0_i32_0 = arith.constant 0 : i32
    %c0_i32_1 = arith.constant 0 : i32
    return %c0_i32, %c0_i32_0 : i32, i32
  }
  func.func @transform_4(%arg0: i32) -> (i32, i32) {
    %c0_i32 = arith.constant 0 : i32
    %c0_i32_0 = arith.constant 0 : i32
    %c0_i32_1 = arith.constant 0 : i32
    return %c0_i32, %c0_i32_0 : i32, i32
  }
  func.func @transform_5(%arg0: i32) -> (i32, i32) {
    %c0_i32 = arith.constant 0 : i32
    %c0_i32_0 = arith.constant 0 : i32
    %c0_i32_1 = arith.constant 0 : i32
    return %c0_i32, %c0_i32_0 : i32, i32
  }
  func.func @transform_6(%arg0: i32) -> (i32, i32) {
    %c0_i32 = arith.constant 0 : i32
    %c0_i32_0 = arith.constant 0 : i32
    %c0_i32_1 = arith.constant 0 : i32
    return %c0_i32, %c0_i32_0 : i32, i32
  }
  func.func @transform_7(%arg0: i32) -> (i32, i32) {
    %c0_i32 = arith.constant 0 : i32
    %c0_i32_0 = arith.constant 0 : i32
    return %arg0, %c0_i32 : i32, i32
  }
}

</mosaic_0001>

<bundles_post_ra>
// kernel: tpu_custom_call.1
= control target key start
LH: loop header
LB: loop body
LE: loop exit
PB: predicated region body
PF: predicated region fallthrough
CT: control target
= control target key end

     0   :  { %vm48_vm0 = vcmask 1044480   ;;  %v1589_v0 = vmov 0.0   ;;  %vm1590_vm1 = vmmov 0   ;;  %vm44_vm2 = vcmask 80896   ;;  %s2067_s0 = inlined_call_operand.vmem [shape: f32[8,10], index: 0, kind: input, shape index: {}]   ;;  %s2068_s1 = inlined_call_operand.vmem [shape: bf16[10,128], index: 1, kind: input, shape index: {}]   ;;  %s2069_s2 = inlined_call_operand.vmem [shape: f32[1,128], index: 2, kind: input, shape index: {}]   ;;  %s2070_s3 = inlined_call_operand.vmem [shape: bf16[128,256], index: 3, kind: input, shape index: {}]   ;;  %s2071_s4 = inlined_call_operand.vmem [shape: f32[1,256], index: 4, kind: input, shape index: {}]   ;;  %s2072_s5 = inlined_call_operand.vmem [shape: bf16[256,784], index: 5, kind: input, shape index: {}]   ;;  %s2073_s6 = inlined_call_operand.vmem [shape: f32[1,784], index: 6, kind: input, shape index: {}]   ;;  %s2074_s7 = inlined_call_operand.hbm [shape: f32[8,784], index: 7, kind: output, shape index: {}]  }
   0x1   :  { %1356 = vmatprep.subr.bf16.mxu0 %v1589_v0  ;;  %v1366_v1 = vld [vmem:[%s2068_s1] sm:$0x1f]   ;;  %1358 = vmatprep.mubr.msk.bf16.mxu0 %vm1590_vm1, %v1589_v0  ;;  %v1370_v7 = vld [vmem:[%s2070_s3 + $0x14] ss:$8 sps:$4 sm:$0xff]   ;;  %v1372_v8 = vld [vmem:[%s2070_s3 + $0x10] ss:$8 sps:$4 sm:$0xff]  }
   0x2   :  { %v28_v2 = vld [vmem:[%s2067_s0] sm:$0xff]  ;;  %v50_v5 = vsel %vm48_vm0, %v1366_v1, 0  ;;  %v1376_v11 = vld [vmem:[%s2070_s3 + $0x34] ss:$8 sps:$4 sm:$0xff]   ;;  %v1378_v12 = vld [vmem:[%s2070_s3 + $0x30] ss:$8 sps:$4 sm:$0xff]  }
   0x3   :  { %v1367_v3 = vld [vmem:[%s2070_s3 + $0x4] ss:$8 sps:$4 sm:$0xff]   ;;  %v1369_v4 = vld [vmem:[%s2070_s3] ss:$8 sps:$4 sm:$0xff]   ;;  %v29_v6 = vpack.c.bf16 %v28_v2, %v28_v2  ;;  %1357 = vmatpush3.bf16.msra.mxu0 %v50_v5  ;;  %v1382_v15 = vld [vmem:[%s2070_s3 + $0x54] ss:$8 sps:$4 sm:$0xff]  }
   0x4   :  { %202 = vmatprep.subr.bf16.mxu1 %v1367_v3  ;;  %v1373_v9 = vld [vmem:[%s2070_s3 + $0x24] ss:$8 sps:$4 sm:$0xff]   ;;  %v1375_v10 = vld [vmem:[%s2070_s3 + $0x20] ss:$8 sps:$4 sm:$0xff]   ;;  %v1384_v16 = vld [vmem:[%s2070_s3 + $0x50] ss:$8 sps:$4 sm:$0xff]  }
   0x5   :  { %203 = vmatpush1.bf16.msra.mxu1 %v1369_v4  ;;  %v1379_v13 = vld [vmem:[%s2070_s3 + $0x44] ss:$8 sps:$4 sm:$0xff]   ;;  %v1381_v14 = vld [vmem:[%s2070_s3 + $0x40] ss:$8 sps:$4 sm:$0xff]  }
   0x6   :  { %204 = vmatprep.subr.bf16.mxu1 %v1370_v7  ;;  %1359 = vmatmul.mubr.msk.bf16.vlgmr.msra.gmra.mrb[0].mxu0 %vm44_vm2, %v29_v6  ;;  %v1385_v17 = vld [vmem:[%s2070_s3 + $0x64] ss:$8 sps:$4 sm:$0xff]  }
   0x9   :  { %205 = vmatpush1.bf16.msra.mxu1 %v1372_v8 }
   0xa   :  { %206 = vmatprep.subr.bf16.mxu1 %v1373_v9 }
   0xd   :  { %207 = vmatpush1.bf16.msra.mxu1 %v1375_v10 }
   0xe   :  { %208 = vmatprep.subr.bf16.mxu1 %v1376_v11 }
  0x11   :  { %209 = vmatpush1.bf16.msra.mxu1 %v1378_v12 }
  0x12   :  { %210 = vmatprep.subr.bf16.mxu1 %v1379_v13 }
  0x15   :  { %211 = vmatpush1.bf16.msra.mxu1 %v1381_v14 }
  0x16   :  { %212 = vmatprep.subr.bf16.mxu1 %v1382_v15 }
  0x19   :  { %213 = vmatpush1.bf16.msra.mxu1 %v1384_v16 }
  0x1a   :  { %214 = vmatprep.subr.bf16.mxu1 %v1385_v17 }
  0x1b   :  { %12 = vsyncpa [#allocation3], 0  ;;  %v1387_v18 = vld [vmem:[%s2070_s3 + $0x60] ss:$8 sps:$4 sm:$0xff]   ;;  %v1388_v19 = vld [vmem:[%s2070_s3 + $0x74] ss:$8 sps:$4 sm:$0xff]  }
  0x1c   :  { %v1390_v20 = vld [vmem:[%s2070_s3 + $0x70] ss:$8 sps:$4 sm:$0xff]   ;;  %v1591_v21 = vmov 0   ;;  %v1391_v22 = vld [vmem:[%s2072_s5] ss:$28 sps:$4 sm:$0xff]   ;;  %vm1185_vm3 = vcmask 130048  }
  0x1d   :  { %215 = vmatpush1.bf16.msra.mxu1 %v1387_v18  ;;  %234 = vmatprep.mubr.bf16.mxu1 %v1591_v21  ;;  %v1393_v23 = vld [vmem:[%s2072_s5 + $0x4] ss:$28 sps:$4 sm:$0xff]   ;;  %v1396_v24 = vld [vmem:[%s2072_s5 + $0xc] ss:$28 sps:$4 sm:$0xff]   ;;  %v1399_v25 = vld [vmem:[%s2072_s5 + $0x3c] ss:$28 sps:$4 sm:$0xff]  }
  0x1e   :  { %216 = vmatprep.subr.bf16.mxu1 %v1388_v19  ;;  %988 = vmatprep.subr.bf16.mxu0 %v1393_v23  ;;  %v1397_v26 = vld [vmem:[%s2072_s5 + $0x38] ss:$28 sps:$4 sm:$0xff]   ;;  %v1403_v28 = vld [vmem:[%s2072_s5 + $0x70] ss:$28 sps:$4 sm:$0xff]   ;;  %v1409_v30 = vld [vmem:[%s2072_s5 + $0xa8] ss:$28 sps:$4 sm:$0xff]  }
  0x1f   :  { %989 = vmatpush1.bf16.msra.mxu0 %v1391_v22  ;;  %v1405_v27 = vld [vmem:[%s2072_s5 + $0x74] ss:$28 sps:$4 sm:$0xff]   ;;  %v1411_v29 = vld [vmem:[%s2072_s5 + $0xac] ss:$28 sps:$4 sm:$0xff]   ;;  %v1417_v31 = vld [vmem:[%s2072_s5 + $0xe4] ss:$28 sps:$4 sm:$0xff]  }
  0x20   :  { %990 = vmatprep.subr.bf16.mxu0 %v1399_v25  ;;  %v1415_v32 = vld [vmem:[%s2072_s5 + $0xe0] ss:$28 sps:$4 sm:$0xff]   ;;  %v1421_v34 = vld [vmem:[%s2072_s5 + $0x118] ss:$28 sps:$4 sm:$0xff]   ;;  %v1427_v36 = vld [vmem:[%s2072_s5 + $0x150] ss:$28 sps:$4 sm:$0xff]  }
  0x21   :  { %217 = vmatpush1.bf16.msra.mxu1 %v1390_v20  ;;  %v1423_v33 = vld [vmem:[%s2072_s5 + $0x11c] ss:$28 sps:$4 sm:$0xff]   ;;  %v1429_v35 = vld [vmem:[%s2072_s5 + $0x154] ss:$28 sps:$4 sm:$0xff]   ;;  %v1435_v37 = vld [vmem:[%s2072_s5 + $0x18c] ss:$28 sps:$4 sm:$0xff]  }
  0x22   :  { %1029 = vmatprep.subr.bf16.mxu1 %v1396_v24  ;;  %v1433_v38 = vld [vmem:[%s2072_s5 + $0x188] ss:$28 sps:$4 sm:$0xff]   ;;  %v1439_v40 = vld [vmem:[%s2072_s5 + $0x1c0] ss:$28 sps:$4 sm:$0xff]   ;;  %v1445_v42 = vld [vmem:[%s2072_s5 + $0x1f8] ss:$28 sps:$4 sm:$0xff]  }
  0x23   :  { %991 = vmatpush1.bf16.msra.mxu0 %v1397_v26  ;;  %v1441_v39 = vld [vmem:[%s2072_s5 + $0x1c4] ss:$28 sps:$4 sm:$0xff]   ;;  %v1447_v41 = vld [vmem:[%s2072_s5 + $0x1fc] ss:$28 sps:$4 sm:$0xff]   ;;  %v1453_v43 = vld [vmem:[%s2072_s5 + $0x234] ss:$28 sps:$4 sm:$0xff]  }
  0x24   :  { %992 = vmatprep.subr.bf16.mxu0 %v1405_v27  ;;  %v1451_v44 = vld [vmem:[%s2072_s5 + $0x230] ss:$28 sps:$4 sm:$0xff]   ;;  %v1457_v46 = vld [vmem:[%s2072_s5 + $0x268] ss:$28 sps:$4 sm:$0xff]   ;;  %v1463_v48 = vld [vmem:[%s2072_s5 + $0x2a0] ss:$28 sps:$4 sm:$0xff]  }
  0x25   :  { %v1459_v45 = vld [vmem:[%s2072_s5 + $0x26c] ss:$28 sps:$4 sm:$0xff]   ;;  %v1465_v47 = vld [vmem:[%s2072_s5 + $0x2a4] ss:$28 sps:$4 sm:$0xff]   ;;  %v1471_v49 = vld [vmem:[%s2072_s5 + $0x2dc] ss:$28 sps:$4 sm:$0xff]  }
  0x26   :  { %v1469_v50 = vld [vmem:[%s2072_s5 + $0x2d8] ss:$28 sps:$4 sm:$0xff]   ;;  %v1201_v51 = vld [vmem:[%s2069_s2] ss:$0 sm:$0xff]  ;;  %v1394_v58 = vld [vmem:[%s2072_s5 + $0x8] ss:$28 sps:$4 sm:$0xff]  }
  0x27   :  { %993 = vmatpush1.bf16.msra.mxu0 %v1403_v28  ;;  %v1402_v60 = vld [vmem:[%s2072_s5 + $0x44] ss:$28 sps:$4 sm:$0xff]   ;;  %v1408_v62 = vld [vmem:[%s2072_s5 + $0x7c] ss:$28 sps:$4 sm:$0xff]   ;;  %v1414_v0 = vld [vmem:[%s2072_s5 + $0xb4] ss:$28 sps:$4 sm:$0xff]  }
  0x28   :  { %994 = vmatprep.subr.bf16.mxu0 %v1411_v29  ;;  %v1400_v61 = vld [vmem:[%s2072_s5 + $0x40] ss:$28 sps:$4 sm:$0xff]   ;;  %v1406_v63 = vld [vmem:[%s2072_s5 + $0x78] ss:$28 sps:$4 sm:$0xff]   ;;  %v1412_v1 = vld [vmem:[%s2072_s5 + $0xb0] ss:$28 sps:$4 sm:$0xff]  }
  0x29   :  { %v1420_v2 = vld [vmem:[%s2072_s5 + $0xec] ss:$28 sps:$4 sm:$0xff]   ;;  %v1426_v4 = vld [vmem:[%s2072_s5 + $0x124] ss:$28 sps:$4 sm:$0xff]   ;;  %v1432_v6 = vld [vmem:[%s2072_s5 + $0x15c] ss:$28 sps:$4 sm:$0xff]  }
  0x2a   :  { %v1418_v3 = vld [vmem:[%s2072_s5 + $0xe8] ss:$28 sps:$4 sm:$0xff]   ;;  %v1424_v5 = vld [vmem:[%s2072_s5 + $0x120] ss:$28 sps:$4 sm:$0xff]   ;;  %v1430_v7 = vld [vmem:[%s2072_s5 + $0x158] ss:$28 sps:$4 sm:$0xff]  }
  0x2b   :  { %995 = vmatpush1.bf16.msra.mxu0 %v1409_v30  ;;  %v1438_v8 = vld [vmem:[%s2072_s5 + $0x194] ss:$28 sps:$4 sm:$0xff]   ;;  %v1444_v10 = vld [vmem:[%s2072_s5 + $0x1cc] ss:$28 sps:$4 sm:$0xff]   ;;  %v1450_v12 = vld [vmem:[%s2072_s5 + $0x204] ss:$28 sps:$4 sm:$0xff]  }
  0x2c   :  { %996 = vmatprep.subr.bf16.mxu0 %v1417_v31  ;;  %v1436_v9 = vld [vmem:[%s2072_s5 + $0x190] ss:$28 sps:$4 sm:$0xff]   ;;  %v1442_v11 = vld [vmem:[%s2072_s5 + $0x1c8] ss:$28 sps:$4 sm:$0xff]   ;;  %v1448_v13 = vld [vmem:[%s2072_s5 + $0x200] ss:$28 sps:$4 sm:$0xff]  }
  0x2d   :  { %v1456_v14 = vld [vmem:[%s2072_s5 + $0x23c] ss:$28 sps:$4 sm:$0xff]   ;;  %v1462_v16 = vld [vmem:[%s2072_s5 + $0x274] ss:$28 sps:$4 sm:$0xff]   ;;  %v1468_v18 = vld [vmem:[%s2072_s5 + $0x2ac] ss:$28 sps:$4 sm:$0xff]  }
  0x2e   :  { %v1454_v15 = vld [vmem:[%s2072_s5 + $0x238] ss:$28 sps:$4 sm:$0xff]   ;;  %v1460_v17 = vld [vmem:[%s2072_s5 + $0x270] ss:$28 sps:$4 sm:$0xff]   ;;  %v1466_v19 = vld [vmem:[%s2072_s5 + $0x2a8] ss:$28 sps:$4 sm:$0xff]  }
  0x2f   :  { %997 = vmatpush1.bf16.msra.mxu0 %v1415_v32  ;;  %v1474_v20 = vld [vmem:[%s2072_s5 + $0x2e4] ss:$28 sps:$4 sm:$0xff]   ;;  %v1477_v22 = vld [vmem:[%s2072_s5 + $0x314] ss:$28 sps:$4 sm:$0xff]   ;;  %v1480_v23 = vld [vmem:[%s2072_s5 + $0x31c] ss:$28 sps:$4 sm:$0xff]   ;;  %v112_v32 = vlaneseq }
  0x30   :  { %998 = vmatprep.subr.bf16.mxu0 %v1423_v33  ;;  %v1472_v21 = vld [vmem:[%s2072_s5 + $0x2e0] ss:$28 sps:$4 sm:$0xff]   ;;  %v1475_v24 = vld [vmem:[%s2072_s5 + $0x310] ss:$28 sps:$4 sm:$0xff]   ;;  %v1478_v25 = vld [vmem:[%s2072_s5 + $0x318] ss:$28 sps:$4 sm:$0xff]  }
  0x31   :  { %v1483_v26 = vld [vmem:[%s2072_s5 + $0x34c] ss:$28 sps:$4 sm:$0xff]   ;;  %v1486_v27 = vld [vmem:[%s2072_s5 + $0x354] ss:$28 sps:$4 sm:$0xff]   ;;  %v1888_v33 = vshrl.u32 %v112_v32, 7 }
  0x32   :  { %v1481_v28 = vld [vmem:[%s2072_s5 + $0x348] ss:$28 sps:$4 sm:$0xff]   ;;  %v1484_v29 = vld [vmem:[%s2072_s5 + $0x350] ss:$28 sps:$4 sm:$0xff]   ;;  %v1490_v31 = vld [vmem:[%s2072_s5 + $0x1d8] ss:$28 sps:$4 sm:$0xff]  }
  0x33   :  { %999 = vmatpush1.bf16.msra.mxu0 %v1421_v34  ;;  %v1489_v30 = vld [vmem:[%s2072_s5 + $0x14] ss:$28 sps:$4 sm:$0xff]   ;;  %v114_v34 = vsub.s32 0, %v1888_v33  ;;  %v375_v32 = vld [vmem:[%s2073_s6] sm:$0x7f] }
  0x34   :  { %1000 = vmatprep.subr.bf16.mxu0 %v1429_v35  ;;  %v110_v35 = vld [vmem:[%s2071_s4] sm:$0x3] }
  0x37   :  { %1001 = vmatpush1.bf16.msra.mxu0 %v1427_v36  ;;  %v118_v36 = vsub.s32 1, %v1888_v33 }
  0x38   :  { %1002 = vmatprep.subr.bf16.mxu0 %v1435_v37  ;;  %v115_v37 = vrot.slane %v110_v35, %v114_v34 }
  0x3b   :  { %1003 = vmatpush1.bf16.msra.mxu0 %v1433_v38  ;;  %v119_v38 = vrot.slane %v110_v35, %v118_v36  ;;  %v391_v35 = vsub.s32 3, %v1888_v33 }
  0x3c   :  { %1004 = vmatprep.subr.bf16.mxu0 %v1441_v39 }
  0x3f   :  { %1005 = vmatpush1.bf16.msra.mxu0 %v1439_v40 }
  0x40   :  { %1006 = vmatprep.subr.bf16.mxu0 %v1447_v41 }
  0x43   :  { %1007 = vmatpush1.bf16.msra.mxu0 %v1445_v42 }
  0x44   :  { %1008 = vmatprep.subr.bf16.mxu0 %v1453_v43 }
  0x47   :  { %1009 = vmatpush1.bf16.msra.mxu0 %v1451_v44 }
  0x48   :  { %1010 = vmatprep.subr.bf16.mxu0 %v1459_v45 }
  0x4b   :  { %1011 = vmatpush1.bf16.msra.mxu0 %v1457_v46 }
  0x4c   :  { %1012 = vmatprep.subr.bf16.mxu0 %v1465_v47 }
  0x4f   :  { %1013 = vmatpush1.bf16.msra.mxu0 %v1463_v48  ;;  %v1487_v48 = vld [vmem:[%s2072_s5 + $0x10] ss:$28 sps:$4 sm:$0xff]  }
  0x50   :  { %1014 = vmatprep.subr.bf16.mxu0 %v1471_v49  ;;  %v1491_v49 = vld [vmem:[%s2072_s5 + $0x18] ss:$28 sps:$4 sm:$0xff]  }
  0x53   :  { %1015 = vmatpush1.bf16.msra.mxu0 %v1469_v50 }
  0x54   :  { %1016 = vmatprep.subr.bf16.mxu0 %v1477_v22  ;;  %v1536_v22 = vld [vmem:[%s2072_s5 + $0x278] ss:$28 sps:$4 sm:$0xff]  }
  0x57   :  { %1017 = vmatpush1.bf16.msra.mxu0 %v1475_v24  ;;  %v1539_v24 = vld [vmem:[%s2072_s5 + $0x2b0] ss:$28 sps:$4 sm:$0xff]  }
  0x58   :  { %1018 = vmatprep.subr.bf16.mxu0 %v1483_v26  ;;  %v1542_v26 = vld [vmem:[%s2072_s5 + $0x2e8] ss:$28 sps:$4 sm:$0xff]  }
  0x5b   :  { %1019 = vmatpush1.bf16.msra.mxu0 %v1481_v28  ;;  %v1545_v28 = vld [vmem:[%s2072_s5 + $0x320] ss:$28 sps:$4 sm:$0xff]  }
  0x5c   :  { %1070 = vmatprep.subr.bf16.mxu0 %v1489_v30  ;;  %v1548_v30 = vld [vmem:[%s2072_s5 + $0x358] ss:$28 sps:$4 sm:$0xff]  }
  0xd9   :  { %v86_v52 = vpop.f32.mrb[0].mxu0 }
  0xda   :  { %v87_v53 = vadd.f32 %v1201_v51, %v86_v52  ;;  %v1360_v54 = vpop.f32.mrb[1].mxu0  ;;  %v1494_v51 = vld [vmem:[%s2072_s5 + $0x4c] ss:$28 sps:$4 sm:$0xff]  }
  0xdb   :  { %v89_v55 = vpop.f32.mrb[2].mxu0  ;;  %v1495_v52 = vld [vmem:[%s2072_s5 + $0x210] ss:$28 sps:$4 sm:$0xff]  }
  0xdc   :  { %v92_v56 = vmax.f32 %v87_v53, 0.0  ;;  %v1361_v57 = vpop.f32.mrb[3].mxu0  ;;  %v1492_v53 = vld [vmem:[%s2072_s5 + $0x48] ss:$28 sps:$4 sm:$0xff]   ;;  %v1496_v54 = vld [vmem:[%s2072_s5 + $0x50] ss:$28 sps:$4 sm:$0xff]  }
  0xdd   :  { %v1499_v55 = vld [vmem:[%s2072_s5 + $0x84] ss:$28 sps:$4 sm:$0xff]  }
  0xde   :  { %v93_v59 = vpack.c.bf16 %v92_v56, %v92_v56  ;;  %v1500_v56 = vld [vmem:[%s2072_s5 + $0x248] ss:$28 sps:$4 sm:$0xff]   ;;  %v1497_v57 = vld [vmem:[%s2072_s5 + $0x80] ss:$28 sps:$4 sm:$0xff]  }
  0xe0   :  { %235 = vmatmul.mubr.bf16.vlgmr.msra.gmra.mrb[0].mxu1 %v93_v59  ;;  %v1504_v59 = vld [vmem:[%s2072_s5 + $0xbc] ss:$28 sps:$4 sm:$0xff]  }
  0xe1   :  { %1030 = vmatpush1.bf16.msra.mxu1 %v1394_v58  ;;  %v1501_v58 = vld [vmem:[%s2072_s5 + $0x88] ss:$28 sps:$4 sm:$0xff]  }
  0xe2   :  { %1031 = vmatprep.subr.bf16.mxu1 %v1402_v60  ;;  %v1505_v60 = vld [vmem:[%s2072_s5 + $0x280] ss:$28 sps:$4 sm:$0xff]  }
  0xe5   :  { %1032 = vmatpush1.bf16.msra.mxu1 %v1400_v61  ;;  %v1502_v61 = vld [vmem:[%s2072_s5 + $0xb8] ss:$28 sps:$4 sm:$0xff]  }
  0xe6   :  { %1033 = vmatprep.subr.bf16.mxu1 %v1408_v62  ;;  %v1506_v62 = vld [vmem:[%s2072_s5 + $0xc0] ss:$28 sps:$4 sm:$0xff]  }
  0xe9   :  { %1034 = vmatpush1.bf16.msra.mxu1 %v1406_v63  ;;  %v1509_v63 = vld [vmem:[%s2072_s5 + $0xf4] ss:$28 sps:$4 sm:$0xff]  }
  0xea   :  { %1035 = vmatprep.subr.bf16.mxu1 %v1414_v0  ;;  %v1510_v0 = vld [vmem:[%s2072_s5 + $0x2b8] ss:$28 sps:$4 sm:$0xff]  }
  0xed   :  { %1036 = vmatpush1.bf16.msra.mxu1 %v1412_v1  ;;  %v1507_v1 = vld [vmem:[%s2072_s5 + $0xf0] ss:$28 sps:$4 sm:$0xff]  }
  0xee   :  { %1037 = vmatprep.subr.bf16.mxu1 %v1420_v2  ;;  %v1511_v2 = vld [vmem:[%s2072_s5 + $0xf8] ss:$28 sps:$4 sm:$0xff]  }
  0xf1   :  { %1038 = vmatpush1.bf16.msra.mxu1 %v1418_v3  ;;  %v1514_v3 = vld [vmem:[%s2072_s5 + $0x12c] ss:$28 sps:$4 sm:$0xff]  }
  0xf2   :  { %1039 = vmatprep.subr.bf16.mxu1 %v1426_v4  ;;  %v1515_v4 = vld [vmem:[%s2072_s5 + $0x2f0] ss:$28 sps:$4 sm:$0xff]  }
  0xf5   :  { %1040 = vmatpush1.bf16.msra.mxu1 %v1424_v5  ;;  %v1512_v5 = vld [vmem:[%s2072_s5 + $0x128] ss:$28 sps:$4 sm:$0xff]  }
  0xf6   :  { %1041 = vmatprep.subr.bf16.mxu1 %v1432_v6  ;;  %v1516_v6 = vld [vmem:[%s2072_s5 + $0x130] ss:$28 sps:$4 sm:$0xff]  }
  0xf9   :  { %1042 = vmatpush1.bf16.msra.mxu1 %v1430_v7  ;;  %v1519_v7 = vld [vmem:[%s2072_s5 + $0x164] ss:$28 sps:$4 sm:$0xff]  }
  0xfa   :  { %1043 = vmatprep.subr.bf16.mxu1 %v1438_v8  ;;  %v1520_v8 = vld [vmem:[%s2072_s5 + $0x328] ss:$28 sps:$4 sm:$0xff]  }
  0xfd   :  { %1044 = vmatpush1.bf16.msra.mxu1 %v1436_v9  ;;  %v1517_v9 = vld [vmem:[%s2072_s5 + $0x160] ss:$28 sps:$4 sm:$0xff]  }
  0xfe   :  { %1045 = vmatprep.subr.bf16.mxu1 %v1444_v10  ;;  %v1521_v10 = vld [vmem:[%s2072_s5 + $0x168] ss:$28 sps:$4 sm:$0xff]  }
 0x101   :  { %1046 = vmatpush1.bf16.msra.mxu1 %v1442_v11  ;;  %v1524_v11 = vld [vmem:[%s2072_s5 + $0x19c] ss:$28 sps:$4 sm:$0xff]  }
 0x102   :  { %1047 = vmatprep.subr.bf16.mxu1 %v1450_v12  ;;  %v1525_v12 = vld [vmem:[%s2072_s5 + $0x360] ss:$28 sps:$4 sm:$0xff]  }
 0x105   :  { %1048 = vmatpush1.bf16.msra.mxu1 %v1448_v13  ;;  %v1522_v13 = vld [vmem:[%s2072_s5 + $0x198] ss:$28 sps:$4 sm:$0xff]  }
 0x106   :  { %1049 = vmatprep.subr.bf16.mxu1 %v1456_v14  ;;  %v1526_v14 = vld [vmem:[%s2072_s5 + $0x1a0] ss:$28 sps:$4 sm:$0xff]  }
 0x109   :  { %1050 = vmatpush1.bf16.msra.mxu1 %v1454_v15  ;;  %v1529_v15 = vld [vmem:[%s2072_s5 + $0x1d4] ss:$28 sps:$4 sm:$0xff]  }
 0x10a   :  { %1051 = vmatprep.subr.bf16.mxu1 %v1462_v16  ;;  %v1527_v16 = vld [vmem:[%s2072_s5 + $0x1d0] ss:$28 sps:$4 sm:$0xff]  }
 0x10d   :  { %1052 = vmatpush1.bf16.msra.mxu1 %v1460_v17  ;;  %v1532_v17 = vld [vmem:[%s2072_s5 + $0x20c] ss:$28 sps:$4 sm:$0xff]  }
 0x10e   :  { %1053 = vmatprep.subr.bf16.mxu1 %v1468_v18  ;;  %v1530_v18 = vld [vmem:[%s2072_s5 + $0x208] ss:$28 sps:$4 sm:$0xff]  }
 0x111   :  { %1054 = vmatpush1.bf16.msra.mxu1 %v1466_v19  ;;  %v1535_v19 = vld [vmem:[%s2072_s5 + $0x244] ss:$28 sps:$4 sm:$0xff]  }
 0x112   :  { %1055 = vmatprep.subr.bf16.mxu1 %v1474_v20  ;;  %v1533_v20 = vld [vmem:[%s2072_s5 + $0x240] ss:$28 sps:$4 sm:$0xff]  }
 0x115   :  { %1056 = vmatpush1.bf16.msra.mxu1 %v1472_v21  ;;  %v1538_v21 = vld [vmem:[%s2072_s5 + $0x27c] ss:$28 sps:$4 sm:$0xff]  }
 0x116   :  { %1057 = vmatprep.subr.bf16.mxu1 %v1480_v23  ;;  %v1541_v23 = vld [vmem:[%s2072_s5 + $0x2b4] ss:$28 sps:$4 sm:$0xff]  }
 0x119   :  { %1058 = vmatpush1.bf16.msra.mxu1 %v1478_v25  ;;  %v1544_v25 = vld [vmem:[%s2072_s5 + $0x2ec] ss:$28 sps:$4 sm:$0xff]  }
 0x11a   :  { %1059 = vmatprep.subr.bf16.mxu1 %v1486_v27  ;;  %v1547_v27 = vld [vmem:[%s2072_s5 + $0x324] ss:$28 sps:$4 sm:$0xff]  }
 0x11d   :  { %1060 = vmatpush1.bf16.msra.mxu1 %v1484_v29  ;;  %v1550_v29 = vld [vmem:[%s2072_s5 + $0x35c] ss:$28 sps:$4 sm:$0xff]   ;;  %s1592_s5 = smov [#allocation2]  }
 0x11e   :  { %1334 = vmatprep.subr.bf16.mxu1 %v1490_v31  ;;  %v387_v31 = vsub.s32 2, %v1888_v33  ;;  %s1193_s6 = sshll.u32 %s1592_s5, 4  ;;  %s1194_s6 = int_to_ptr.vmem [resolvable:$true] %s1193_s6 }
 0x11f   :  { %s1565_s21 = scalar_lea.vmem %s1194_s6, 896  ;;  %p1570_p1 = scmp.lt.s32.totalorder %s1194_s6, %s1194_s6 }
 0x120   :  { %p1566_p0 = scmp.ne.s32.totalorder %s1194_s6, %s1565_s21  ;;  %p1571_p2 = scmp.lt.s32.totalorder %s1565_s21, %s1565_s21 }
 0x122   :  { %p1572_p3 = por %p1571_p2, %p1570_p1 }
 0x124   :  { %p1573_p4 = pnand %p1572_p3, %p1566_p0 }
 0x1b3   :  { %v236_v39 = vpop.f32.mrb[0].mxu1 }
 0x1b4   :  { %v237_v40 = vadd.f32 %v236_v39, %v115_v37  ;;  %v238_v41 = vpop.f32.mrb[1].mxu1  ;;  %v380_v37 = vrot.slane %v375_v32, %v114_v34  ;;  %v384_v39 = vrot.slane %v375_v32, %v118_v36 }
 0x1b5   :  { %v239_v42 = vadd.f32 %v238_v41, %v119_v38  ;;  %v240_v43 = vpop.f32.mrb[2].mxu1  ;;  %v388_v38 = vrot.slane %v375_v32, %v387_v31 }
 0x1b6   :  { %v243_v44 = vmax.f32 %v237_v40, 0.0  ;;  %v241_v45 = vpop.f32.mrb[3].mxu1  ;;  %v392_v40 = vrot.slane %v375_v32, %v391_v35 }
 0x1b7   :  { %v244_v46 = vmax.f32 %v239_v42, 0.0 }
 0x1b8   :  { %v1905_v50 = vpack.c.bf16 %v243_v44, %v243_v44 }
 0x1b9   :  { %v246_v47 = vpack.c.bf16 %v244_v46, %v244_v46 }
 0x1bb   :  { %1020 = vmatprep.mubr.bf16.mxu0 %v246_v47  ;;  %1061 = vmatprep.mubr.bf16.mxu1 %v246_v47 }
 0x1bc   :  { %1021 = vmatmul.mubr.bf16.vlgmr.msra.gmra.mrb[4].mxu0 %v1905_v50  ;;  %1062 = vmatmul.mubr.bf16.vlgmr.msra.gmra.mrb[4].mxu1 %v1905_v50 }
 0x1bd   :  { %1071 = vmatpush1.bf16.msra.mxu0 %v1487_v48  ;;  %1335 = vmatpush3.bf16.msra.mxu1 %v1491_v49 }
 0x1be   :  { %1102 = vmatprep.mubr.bf16.mxu0 %v246_v47  ;;  %1143 = vmatprep.mubr.bf16.mxu1 %v246_v47 }
 0x1bf   :  { %1072 = vmatprep.subr.bf16.mxu0 %v1494_v51  ;;  %1336 = vmatprep.subr.bf16.mxu1 %v1495_v52 }
 0x1c1   :  { %1073 = vmatpush1.bf16.msra.mxu0 %v1492_v53  ;;  %1337 = vmatpush3.bf16.msra.mxu1 %v1496_v54 }
 0x1c2   :  { %1074 = vmatprep.subr.bf16.mxu0 %v1499_v55  ;;  %1338 = vmatprep.subr.bf16.mxu1 %v1500_v56 }
 0x1c5   :  { %1075 = vmatpush1.bf16.msra.mxu0 %v1497_v57  ;;  %1339 = vmatpush3.bf16.msra.mxu1 %v1501_v58 }
 0x1c6   :  { %1076 = vmatprep.subr.bf16.mxu0 %v1504_v59  ;;  %1340 = vmatprep.subr.bf16.mxu1 %v1505_v60 }
 0x1c9   :  { %1077 = vmatpush1.bf16.msra.mxu0 %v1502_v61  ;;  %1341 = vmatpush3.bf16.msra.mxu1 %v1506_v62 }
 0x1ca   :  { %1078 = vmatprep.subr.bf16.mxu0 %v1509_v63  ;;  %1342 = vmatprep.subr.bf16.mxu1 %v1510_v0 }
 0x1cd   :  { %1079 = vmatpush1.bf16.msra.mxu0 %v1507_v1  ;;  %1343 = vmatpush3.bf16.msra.mxu1 %v1511_v2 }
 0x1ce   :  { %1080 = vmatprep.subr.bf16.mxu0 %v1514_v3  ;;  %1344 = vmatprep.subr.bf16.mxu1 %v1515_v4  ;;  %v403_v3 = vsub.s32 6, %v1888_v33 }
 0x1d1   :  { %1081 = vmatpush1.bf16.msra.mxu0 %v1512_v5  ;;  %1345 = vmatpush3.bf16.msra.mxu1 %v1516_v6  ;;  %v404_v5 = vrot.slane %v375_v32, %v403_v3 }
 0x1d2   :  { %1082 = vmatprep.subr.bf16.mxu0 %v1519_v7  ;;  %1346 = vmatprep.subr.bf16.mxu1 %v1520_v8 }
 0x1d5   :  { %1083 = vmatpush1.bf16.msra.mxu0 %v1517_v9  ;;  %1347 = vmatpush3.bf16.msra.mxu1 %v1521_v10 }
 0x1d6   :  { %1084 = vmatprep.subr.bf16.mxu0 %v1524_v11  ;;  %1348 = vmatprep.subr.bf16.mxu1 %v1525_v12 }
 0x1d9   :  { %1085 = vmatpush1.bf16.msra.mxu0 %v1522_v13  ;;  %1349 = vmatpush3.bf16.msra.mxu1 %v1526_v14 }
 0x1da   :  { %1086 = vmatprep.subr.bf16.mxu0 %v1529_v15  ;;  %v395_v15 = vsub.s32 4, %v1888_v33 }
 0x1dc   :  { %1144 = vmatmul.mubr.bf16.vlgmr.msra.gmra.mrb[8].mxu1 %v1905_v50 }
 0x1dd   :  { %1087 = vmatpush1.bf16.msra.mxu0 %v1527_v16  ;;  %v399_v16 = vsub.s32 5, %v1888_v33 }
 0x1de   :  { %1088 = vmatprep.subr.bf16.mxu0 %v1532_v17  ;;  %v396_v17 = vrot.slane %v375_v32, %v395_v15 }
 0x1e1   :  { %1089 = vmatpush1.bf16.msra.mxu0 %v1530_v18  ;;  %v400_v18 = vrot.slane %v375_v32, %v399_v16 }
 0x1e2   :  { %1090 = vmatprep.subr.bf16.mxu0 %v1535_v19 }
 0x1e5   :  { %1091 = vmatpush1.bf16.msra.mxu0 %v1533_v20 }
 0x1e6   :  { %1092 = vmatprep.subr.bf16.mxu0 %v1538_v21 }
 0x1e9   :  { %1093 = vmatpush1.bf16.msra.mxu0 %v1536_v22 }
 0x1ea   :  { %1094 = vmatprep.subr.bf16.mxu0 %v1541_v23 }
 0x1ed   :  { %1095 = vmatpush1.bf16.msra.mxu0 %v1539_v24 }
 0x1ee   :  { %1096 = vmatprep.subr.bf16.mxu0 %v1544_v25 }
 0x1f1   :  { %1097 = vmatpush1.bf16.msra.mxu0 %v1542_v26 }
 0x1f2   :  { %1098 = vmatprep.subr.bf16.mxu0 %v1547_v27 }
 0x1f5   :  { %1099 = vmatpush1.bf16.msra.mxu0 %v1545_v28 }
 0x1f6   :  { %1100 = vmatprep.subr.bf16.mxu0 %v1550_v29 }
 0x1f9   :  { %1101 = vmatpush1.bf16.msra.mxu0 %v1548_v30 }
 0x1fc   :  { %1103 = vmatmul.mubr.bf16.vlgmr.msra.gmra.mrb[8].mxu0 %v1905_v50 }
 0x28f   :  { %v1022_v41 = vpop.f32.mrb[4].mxu0  ;;  %v1063_v42 = vpop.f32.mrb[4].mxu1 }
 0x290   :  { %v1023_v43 = vadd.f32 %v1022_v41, %v380_v37  ;;  %v1064_v44 = vadd.f32 %v1063_v42, %v388_v38  ;;  %v1024_v45 = vpop.f32.mrb[5].mxu0  ;;  %v1065_v46 = vpop.f32.mrb[5].mxu1 }
 0x291   :  { %v1025_v47 = vadd.f32 %v1024_v45, %v384_v39  ;;  %v1066_v48 = vadd.f32 %v1065_v46, %v392_v40  ;;  %v1026_v49 = vpop.f32.mrb[6].mxu0  ;;  %v1067_v50 = vpop.f32.mrb[6].mxu1 }
 0x292   :  { %v1151_v51 = vmul.f32 0.5, %v1023_v43  ;;  %v1153_v52 = vmul.f32 0.5, %v1064_v44  ;;  %v1027_v53 = vpop.f32.mrb[7].mxu0  ;;  %v1068_v54 = vpop.f32.mrb[7].mxu1 }
 0x293   :  { %v1152_v34 = vmul.f32 0.5, %v1025_v47  ;;  %v1154_v55 = vmul.f32 0.5, %v1066_v48 }
 0x294   :  { %1551 = vtanh.f32 %v1151_v51 }
 0x295   :  { %1553 = vtanh.f32 %v1153_v52 }
 0x296   :  { %1555 = vtanh.f32 %v1152_v34 }
 0x297   :  { %1557 = vtanh.f32 %v1154_v55 }
 0x29e   :  { %v1552_v36 = vpop.eup %1551 }
 0x29f   :  { %v1554_v56 = vpop.eup %1553  ;;  %v1165_v57 = vmul.f32 0.5, %v1552_v36 }
 0x2a0   :  { %v1556_v58 = vpop.eup %1555  ;;  %v1167_v59 = vmul.f32 0.5, %v1554_v56 }
 0x2a1   :  { %v1558_v60 = vpop.eup %1557  ;;  %v1172_v61 = vadd.f32 0.5, %v1165_v57  ;;  %v1166_v62 = vmul.f32 0.5, %v1556_v58 }
 0x2a2   :  { %v1174_v63 = vadd.f32 0.5, %v1167_v59  ;;  %v1168_v0 = vmul.f32 0.5, %v1558_v60 }
 0x2a3   :  { %1179 = vst [vmem:[#allocation2] sm:$0xff] %v1172_v61  ;;  %v1173_v1 = vadd.f32 0.5, %v1166_v62 }
 0x2a4   :  { %1181 = vst [vmem:[#allocation2 + $0x10] sm:$0xff] %v1174_v63  ;;  %v1175_v2 = vadd.f32 0.5, %v1168_v0 }
 0x2a5   :  { %1180 = vst [vmem:[#allocation2 + $0x8] sm:$0xff] %v1173_v1 }
 0x2a6   :  { %1182 = vst [vmem:[#allocation2 + $0x18] sm:$0xff] %v1175_v2 }
 0x2af   :  { %v1350_v4 = vpop.f32.mrb[8].mxu1 }
 0x2b0   :  { %v1351_v6 = vpop.f32.mrb[9].mxu1 }
 0x2b1   :  { %v1352_v7 = vadd.f32 %v1351_v6, %v1350_v4  ;;  %v1353_v8 = vpop.f32.mrb[10].mxu1 }
 0x2b2   :  { %v1354_v9 = vpop.f32.mrb[11].mxu1 }
 0x2b3   :  { %v1146_v10 = vadd.f32 %v1352_v7, %v404_v5 }
 0x2b5   :  { %v1157_v11 = vmul.f32 0.5, %v1146_v10 }
 0x2b7   :  { %1559 = vtanh.f32 %v1157_v11 }
 0x2c1   :  { %v1560_v12 = vpop.eup %1559 }
 0x2c2   :  { %v1171_v13 = vmul.f32 0.5, %v1560_v12 }
 0x2c4   :  { %v1178_v14 = vadd.f32 0.5, %v1171_v13 }
 0x2c6   :  { %1186 = vst.msk [vmem:[#allocation2 + $0x30] sm:$0xff] %vm1185_vm3, %v1178_v14 }
 0x2cf   :  { %v1104_v19 = vpop.f32.mrb[8].mxu0 }
 0x2d0   :  { %v1105_v20 = vadd.f32 %v1104_v19, %v396_v17  ;;  %v1106_v21 = vpop.f32.mrb[9].mxu0 }
 0x2d1   :  { %v1107_v22 = vadd.f32 %v1106_v21, %v400_v18  ;;  %v1108_v23 = vpop.f32.mrb[10].mxu0 }
 0x2d2   :  { %v1155_v24 = vmul.f32 0.5, %v1105_v20  ;;  %v1109_v25 = vpop.f32.mrb[11].mxu0 }
 0x2d3   :  { %v1156_v26 = vmul.f32 0.5, %v1107_v22 }
 0x2d4   :  { %1561 = vtanh.f32 %v1155_v24 }
 0x2d5   :  { %1563 = vtanh.f32 %v1156_v26 }
 0x2de   :  { %v1562_v27 = vpop.eup %1561 }
 0x2df   :  { %v1564_v28 = vpop.eup %1563  ;;  %v1169_v29 = vmul.f32 0.5, %v1562_v27 }
 0x2e0   :  { %v1170_v30 = vmul.f32 0.5, %v1564_v28 }
 0x2e1   :  { %v1176_v31 = vadd.f32 0.5, %v1169_v29 }
 0x2e2   :  { %v1177_v33 = vadd.f32 0.5, %v1170_v30 }
 0x2e3   :  { %1183 = vst [vmem:[#allocation2 + $0x20] sm:$0xff] %v1176_v31 }
 0x2e4   :  { %1184 = vst [vmem:[#allocation2 + $0x28] sm:$0xff] %v1177_v33 }
 0x2e5   :  { %1576 = shalt.err (!%p1573_p4)
}
 0x2e6   :  { %s1577_s23 = scalar_lea.hbm %s2074_s7, 896 }
 0x2e7   :  { %p1578_p5 = scmp.ne.s32.totalorder %s2074_s7, %s1577_s23  ;;  %p1581_p6 = scmp.lt.u32.totalorder %s1577_s23, %s2074_s7 }
 0x2e9   :  { %p1583_p7 = pnand %p1581_p6, %p1578_p5 }
 0x2eb   :  { %1586 = shalt.err (!%p1583_p7)
}
 0x2ec   :  { %1196 = dma.vmem_to_hbm [thread:$0]  %s1194_s6, 896, %s2074_s7, [#allocation3]  }
 0x2ed   :  { %1587 = dma.done.wait [#allocation3], 896  }
 0x2ee   :  { %1588 = vsyncadd [#allocation3], 4294966400 }
 0x2ef   :  { %1200 = vsyncpa [#allocation3], 1 }

</bundles_post_ra>
